<compile_context>
chip_gen: v7x
topology: tpu7x:2x2x1
jax: 0.10.0
libtpu: 0.0.40
codegen_flags: <defaults>
</compile_context>

<pallas_src>
import jax
import jax.numpy as jnp
from jax.experimental import pallas as pl
from jax.experimental.pallas import tpu as pltpu

# ----- config (small synthetic sizes consistent with the module) -----
B = 8              # number of subject/object pairs (batch)
S = 16             # flattened ROI spatial size (H*W of pooled region)
FINAL_DIM = 32     # config.FINAL_DIM
HIDDEN_DIM = 64    # config.HIDDEN_DIM
NUM_CLASSES = 21   # default num_classes
PAD = 128          # lane-dense padded width for emb / hidden / pred


def _net_head_kernel(subj_ref, obj_ref, union_ref,
                     we_ref, w1_ref, w2_ref, b_ref,
                     emb_ref, pred_ref):
    # Spatial mean-pool: sublane sum over S (XLU; free slot here), 1/S is
    # folded into the untiled embed weight.
    s = jnp.sum(subj_ref[...], axis=1)          # (tb, F) f32
    o = jnp.sum(obj_ref[...], axis=1)
    u = jnp.sum(union_ref[...], axis=1)

    bias = b_ref[...]                            # (3, PAD) f32

    # embed_proj == cat(subj,obj,union) @ We.T + be, split into three K=F dots
    # against the stacked bf16 weight slices; f32 accumulate, f32 bias-add.
    emb = (jnp.dot(s.astype(we_ref.dtype), we_ref[0],
                   preferred_element_type=jnp.float32)
           + jnp.dot(o.astype(we_ref.dtype), we_ref[1],
                     preferred_element_type=jnp.float32)
           + jnp.dot(u.astype(we_ref.dtype), we_ref[2],
                     preferred_element_type=jnp.float32)
           + bias[0:1])
    emb_ref[...] = emb                           # (tb, 128) unmasked lane-dense vst

    # classifier: Linear -> ReLU -> Linear; bf16 MXU operands, f32 VPU math.
    h = jnp.maximum(
        jnp.dot(emb.astype(w1_ref.dtype), w1_ref[...],
                preferred_element_type=jnp.float32) + bias[1:2],
        0.0)
    pred = jnp.dot(h.astype(w2_ref.dtype), w2_ref[...],
                   preferred_element_type=jnp.float32) + bias[2:3]
    pred_ref[...] = pred                         # (tb, 128) unmasked store


def prepare_params(params):
    """One-time (init-time) weight prep — hoisted out of the per-call path."""
    we, be, w1, b1, w2, b2 = (params["we"], params["be"], params["w1"],
                              params["b1"], params["w2"], params["b2"])
    # PyTorch Linear weights are (out, in); kernel wants (in, out).
    we_t = we.T.astype(jnp.float32)                      # (3F, F)
    # Split into per-group (subj/obj/union) slices, fold the 1/S mean scale,
    # zero-pad the output lanes to 128, cast to bf16 for half-size DMA.
    we_stack = we_t.reshape(3, FINAL_DIM, FINAL_DIM) / S         # (3, F, F)
    we_stack = jnp.pad(we_stack, ((0, 0), (0, 0), (0, PAD - FINAL_DIM)))
    we_stack = we_stack.astype(jnp.bfloat16)                     # (3, F, 128)

    w1_p = jnp.zeros((PAD, PAD), jnp.float32).at[:FINAL_DIM, :HIDDEN_DIM]\
        .set(w1.T).astype(jnp.bfloat16)
    w2_p = jnp.zeros((PAD, PAD), jnp.float32).at[:HIDDEN_DIM, :NUM_CLASSES]\
        .set(w2.T).astype(jnp.bfloat16)

    # All three biases in one (3, 128) f32 operand (fewer DMA descriptors).
    biases = jnp.zeros((3, PAD), jnp.float32)
    biases = biases.at[0, :FINAL_DIM].set(be)
    biases = biases.at[1, :HIDDEN_DIM].set(b1)
    biases = biases.at[2, :NUM_CLASSES].set(b2)
    return dict(we=we_stack, w1=w1_p, w2=w2_p, b=biases)


def _batch_tile(b):
    """Batch tile: whole batch when tiny; else a multiple of 8 giving >= 2
    grid steps (so ("parallel",) shards across v7x's two TensorCores), capped
    at 256 to fill the MXU M dimension without oversizing VMEM on v7x."""
    if b <= 8:
        return b
    return min(256, ((b + 1) // 2 + 7) // 8 * 8)


def _pad_batch(x, bp):
    b = x.shape[0]
    if b == bp:
        return x
    return jnp.pad(x, ((0, bp - b), (0, 0), (0, 0)))


@jax.jit
def net_forward(subj, obj, union, prepped):
    """subj/obj/union: (B, S, FINAL_DIM) float32 pooled-region feature maps."""
    b = subj.shape[0]
    tb = _batch_tile(b)
    bp = -(-b // tb) * tb                      # pad batch to a multiple of tb
    subj, obj, union = (_pad_batch(a, bp) for a in (subj, obj, union))
    grid = (bp // tb,)

    act = lambda i: (i, 0, 0)                  # activations: tile over batch
    row = lambda i: (i, 0)                     # outputs: tile over batch
    full2 = lambda i: (0, 0)                   # resident weights / biases
    full3 = lambda i: (0, 0, 0)

    flops = bp * (3 * S * FINAL_DIM                      # spatial sum-pool
                  + 2 * 3 * FINAL_DIM * FINAL_DIM        # embed_proj
                  + 2 * FINAL_DIM * HIDDEN_DIM           # classifier fc1
                  + 2 * HIDDEN_DIM * NUM_CLASSES)        # classifier fc2
    w_bytes = ((prepped["we"].size + prepped["w1"].size + prepped["w2"].size) * 2
               + prepped["b"].size * 4)
    act_bytes = 3 * bp * S * FINAL_DIM * 4 + 2 * bp * PAD * 4
    cost = pl.CostEstimate(flops=flops, transcendentals=0,
                           bytes_accessed=w_bytes + act_bytes)

    emb_p, pred_p = pl.pallas_call(
        _net_head_kernel,
        out_shape=(jax.ShapeDtypeStruct((bp, PAD), jnp.float32),
                   jax.ShapeDtypeStruct((bp, PAD), jnp.float32)),
        grid=grid,
        in_specs=[pl.BlockSpec((tb, S, FINAL_DIM), act),      # subj
                  pl.BlockSpec((tb, S, FINAL_DIM), act),      # obj
                  pl.BlockSpec((tb, S, FINAL_DIM), act),      # union
                  pl.BlockSpec((3, FINAL_DIM, PAD), full3),   # We (bf16, 1/S folded)
                  pl.BlockSpec((PAD, PAD), full2),            # W1 (bf16)
                  pl.BlockSpec((PAD, PAD), full2),            # W2 (bf16)
                  pl.BlockSpec((3, PAD), full2)],             # biases (f32)
        out_specs=(pl.BlockSpec((tb, PAD), row),
                   pl.BlockSpec((tb, PAD), row)),
        compiler_params=pltpu.CompilerParams(
            dimension_semantics=("parallel",)),
        cost_estimate=cost,
    )(subj, obj, union, prepped["we"], prepped["w1"], prepped["w2"],
      prepped["b"])

    # Slice off batch padding and lane padding.
    return emb_p[:b, :FINAL_DIM], pred_p[:b, :NUM_CLASSES]


def _init_params(key):
    ks = jax.random.split(key, 6)

    def lin(kw, kb, fan_in, fan_out):
        bound = 1.0 / jnp.sqrt(fan_in)
        w = jax.random.uniform(kw, (fan_out, fan_in), jnp.float32, -bound, bound)
        b = jax.random.uniform(kb, (fan_out,), jnp.float32, -bound, bound)
        return w, b

    we, be = lin(ks[0], ks[1], 3 * FINAL_DIM, FINAL_DIM)      # embed_proj
    w1, b1 = lin(ks[2], ks[3], FINAL_DIM, HIDDEN_DIM)         # classifier[0]
    w2, b2 = lin(ks[4], ks[5], HIDDEN_DIM, NUM_CLASSES)       # classifier[2]
    return dict(we=we, be=be, w1=w1, b1=b1, w2=w2, b2=b2)


def _reference(subj, obj, union, p):
    sv, ov, uv = (jnp.mean(subj, 1), jnp.mean(obj, 1), jnp.mean(union, 1))
    feats = jnp.concatenate([sv, ov, uv], -1)
    emb = feats @ p["we"].T + p["be"]
    h = jnp.maximum(emb @ p["w1"].T + p["b1"], 0.0)
    pred = h @ p["w2"].T + p["b2"]
    return emb, pred


if __name__ == "__main__":
    key = jax.random.PRNGKey(0)
    k_p, k_s, k_o, k_u, k_s2, k_o2, k_u2 = jax.random.split(key, 7)
    params = _init_params(k_p)
    prepped = jax.block_until_ready(prepare_params(params))   # one-time prep

    # --- main check: B = 8 pairs (grid = (1,)) ---
    subj = jax.random.normal(k_s, (B, S, FINAL_DIM), jnp.float32)
    obj = jax.random.normal(k_o, (B, S, FINAL_DIM), jnp.float32)
    union = jax.random.normal(k_u, (B, S, FINAL_DIM), jnp.float32)

    emb, pred = net_forward(subj, obj, union, prepped)
    jax.block_until_ready((emb, pred))

    emb_ref, pred_ref = _reference(subj, obj, union, params)
    assert emb.shape == (B, FINAL_DIM) and pred.shape == (B, NUM_CLASSES)
    # bf16 MXU operands (f32 accumulate) -> 1e-2 tolerance vs f32 reference.
    assert jnp.allclose(emb, emb_ref, atol=1e-2, rtol=1e-2)
    assert jnp.allclose(pred, pred_ref, atol=1e-2, rtol=1e-2)

    # --- second check: larger, non-multiple batch exercises zero-padding and
    # the >=2-step parallel grid (both v7x TensorCores) ---
    B2 = 40
    subj2 = jax.random.normal(k_s2, (B2, S, FINAL_DIM), jnp.float32)
    obj2 = jax.random.normal(k_o2, (B2, S, FINAL_DIM), jnp.float32)
    union2 = jax.random.normal(k_u2, (B2, S, FINAL_DIM), jnp.float32)

    emb2, pred2 = net_forward(subj2, obj2, union2, prepped)
    jax.block_until_ready((emb2, pred2))

    emb2_ref, pred2_ref = _reference(subj2, obj2, union2, params)
    assert emb2.shape == (B2, FINAL_DIM) and pred2.shape == (B2, NUM_CLASSES)
    assert jnp.allclose(emb2, emb2_ref, atol=1e-2, rtol=1e-2)
    assert jnp.allclose(pred2, pred2_ref, atol=1e-2, rtol=1e-2)

    print("KERNEL_OK")
</pallas_src>

<mosaic_0001>
module attributes {stable_mosaic.version = 11 : i64} {
  func.func @_net_head_kernel(%arg0: i32, %arg1: memref<8x16x32xf32, #tpu.memory_space<vmem>>, %arg2: memref<8x16x32xf32, #tpu.memory_space<vmem>>, %arg3: memref<8x16x32xf32, #tpu.memory_space<vmem>>, %arg4: memref<3x32x128xbf16, #tpu.memory_space<vmem>>, %arg5: memref<128x128xbf16, #tpu.memory_space<vmem>>, %arg6: memref<128x128xbf16, #tpu.memory_space<vmem>>, %arg7: memref<3x128xf32, #tpu.memory_space<vmem>>, %arg8: memref<8x128xf32, #tpu.memory_space<vmem>>, %arg9: memref<8x128xf32, #tpu.memory_space<vmem>>) attributes {dimension_semantics = [#tpu.dimension_semantics<parallel>], iteration_bounds = array<i64: 1>, scalar_prefetch = 0 : i64, scratch_operands = 0 : i64, tpu.core_type = #tpu.core_type<tc>, window_params = [{transform_indices = @transform_0, window_bounds = array<i64: 8, 16, 32>}, {transform_indices = @transform_1, window_bounds = array<i64: 8, 16, 32>}, {transform_indices = @transform_2, window_bounds = array<i64: 8, 16, 32>}, {pipeline_mode = #tpu.pipeline_mode<synchronous>, transform_indices = @transform_3, window_bounds = array<i64: 3, 32, 128>}, {pipeline_mode = #tpu.pipeline_mode<synchronous>, transform_indices = @transform_4, window_bounds = array<i64: 128, 128>}, {pipeline_mode = #tpu.pipeline_mode<synchronous>, transform_indices = @transform_5, window_bounds = array<i64: 128, 128>}, {pipeline_mode = #tpu.pipeline_mode<synchronous>, transform_indices = @transform_6, window_bounds = array<i64: 3, 128>}, {transform_indices = @transform_7, window_bounds = array<i64: 8, 128>}, {transform_indices = @transform_8, window_bounds = array<i64: 8, 128>}]} {
    %c0 = arith.constant 0 : index
    %c0_0 = arith.constant 0 : index
    %c0_1 = arith.constant 0 : index
    %0 = vector.load %arg1[%c0, %c0_0, %c0_1] : memref<8x16x32xf32, #tpu.memory_space<vmem>>, vector<8x16x32xf32>
    %cst = arith.constant dense<0.000000e+00> : vector<8x32xf32>
    %1 = vector.multi_reduction <add>, %0, %cst [1] : vector<8x16x32xf32> to vector<8x32xf32>
    %c0_2 = arith.constant 0 : index
    %c0_3 = arith.constant 0 : index
    %c0_4 = arith.constant 0 : index
    %2 = vector.load %arg2[%c0_2, %c0_3, %c0_4] : memref<8x16x32xf32, #tpu.memory_space<vmem>>, vector<8x16x32xf32>
    %cst_5 = arith.constant dense<0.000000e+00> : vector<8x32xf32>
    %3 = vector.multi_reduction <add>, %2, %cst_5 [1] : vector<8x16x32xf32> to vector<8x32xf32>
    %c0_6 = arith.constant 0 : index
    %c0_7 = arith.constant 0 : index
    %c0_8 = arith.constant 0 : index
    %4 = vector.load %arg3[%c0_6, %c0_7, %c0_8] : memref<8x16x32xf32, #tpu.memory_space<vmem>>, vector<8x16x32xf32>
    %cst_9 = arith.constant dense<0.000000e+00> : vector<8x32xf32>
    %5 = vector.multi_reduction <add>, %4, %cst_9 [1] : vector<8x16x32xf32> to vector<8x32xf32>
    %c0_10 = arith.constant 0 : index
    %c0_11 = arith.constant 0 : index
    %6 = vector.load %arg7[%c0_10, %c0_11] : memref<3x128xf32, #tpu.memory_space<vmem>>, vector<3x128xf32>
    %7 = arith.truncf %1 : vector<8x32xf32> to vector<8x32xbf16>
    %c0_12 = arith.constant 0 : index
    %c0_13 = arith.constant 0 : index
    %c0_14 = arith.constant 0 : index
    %8 = vector.load %arg4[%c0_12, %c0_13, %c0_14] : memref<3x32x128xbf16, #tpu.memory_space<vmem>>, vector<1x32x128xbf16>
    %9 = vector.shape_cast %8 : vector<1x32x128xbf16> to vector<32x128xbf16>
    %cst_15 = arith.constant dense<0.000000e+00> : vector<8x128xf32>
    %10 = tpu.matmul %7, %9, %cst_15 {dimension_numbers = #tpu.dot_dimension_numbers<[1], [0], [0], [1], [0, 0, 1, 1], [], []>} : vector<8x32xbf16>, vector<32x128xbf16>, vector<8x128xf32> -> vector<8x128xf32>
    %11 = arith.truncf %3 : vector<8x32xf32> to vector<8x32xbf16>
    %c1 = arith.constant 1 : index
    %c0_16 = arith.constant 0 : index
    %c0_17 = arith.constant 0 : index
    %12 = vector.load %arg4[%c1, %c0_16, %c0_17] : memref<3x32x128xbf16, #tpu.memory_space<vmem>>, vector<1x32x128xbf16>
    %13 = vector.shape_cast %12 : vector<1x32x128xbf16> to vector<32x128xbf16>
    %cst_18 = arith.constant dense<0.000000e+00> : vector<8x128xf32>
    %14 = tpu.matmul %11, %13, %cst_18 {dimension_numbers = #tpu.dot_dimension_numbers<[1], [0], [0], [1], [0, 0, 1, 1], [], []>} : vector<8x32xbf16>, vector<32x128xbf16>, vector<8x128xf32> -> vector<8x128xf32>
    %15 = arith.addf %10, %14 : vector<8x128xf32>
    %16 = arith.truncf %5 : vector<8x32xf32> to vector<8x32xbf16>
    %c2 = arith.constant 2 : index
    %c0_19 = arith.constant 0 : index
    %c0_20 = arith.constant 0 : index
    %17 = vector.load %arg4[%c2, %c0_19, %c0_20] : memref<3x32x128xbf16, #tpu.memory_space<vmem>>, vector<1x32x128xbf16>
    %18 = vector.shape_cast %17 : vector<1x32x128xbf16> to vector<32x128xbf16>
    %cst_21 = arith.constant dense<0.000000e+00> : vector<8x128xf32>
    %19 = tpu.matmul %16, %18, %cst_21 {dimension_numbers = #tpu.dot_dimension_numbers<[1], [0], [0], [1], [0, 0, 1, 1], [], []>} : vector<8x32xbf16>, vector<32x128xbf16>, vector<8x128xf32> -> vector<8x128xf32>
    %20 = arith.addf %15, %19 : vector<8x128xf32>
    %21 = vector.extract_strided_slice %6 {offsets = [0, 0], sizes = [1, 128], strides = [1, 1]} : vector<3x128xf32> to vector<1x128xf32>
    %22 = vector.broadcast %21 : vector<1x128xf32> to vector<8x128xf32>
    %23 = arith.addf %20, %22 : vector<8x128xf32>
    %c0_22 = arith.constant 0 : index
    %c0_23 = arith.constant 0 : index
    %24 = vector.load %arg8[%c0_22, %c0_23] : memref<8x128xf32, #tpu.memory_space<vmem>>, vector<8x128xf32>
    tpu.vector_store %arg8[%c0_22, %c0_23], %23 {strides = array<i32>} : memref<8x128xf32, #tpu.memory_space<vmem>>, vector<8x128xf32>,
    %25 = arith.truncf %23 : vector<8x128xf32> to vector<8x128xbf16>
    %c0_24 = arith.constant 0 : index
    %c0_25 = arith.constant 0 : index
    %26 = vector.load %arg5[%c0_24, %c0_25] : memref<128x128xbf16, #tpu.memory_space<vmem>>, vector<128x128xbf16>
    %cst_26 = arith.constant dense<0.000000e+00> : vector<8x128xf32>
    %27 = tpu.matmul %25, %26, %cst_26 {dimension_numbers = #tpu.dot_dimension_numbers<[1], [0], [0], [1], [0, 0, 1, 1], [], []>} : vector<8x128xbf16>, vector<128x128xbf16>, vector<8x128xf32> -> vector<8x128xf32>
    %28 = vector.extract_strided_slice %6 {offsets = [1, 0], sizes = [1, 128], strides = [1, 1]} : vector<3x128xf32> to vector<1x128xf32>
    %29 = vector.broadcast %28 : vector<1x128xf32> to vector<8x128xf32>
    %30 = arith.addf %27, %29 : vector<8x128xf32>
    %cst_27 = arith.constant 0.000000e+00 : f32
    %31 = vector.broadcast %cst_27 : f32 to vector<8x128xf32>
    %32 = arith.maximumf %30, %31 : vector<8x128xf32>
    %33 = arith.truncf %32 : vector<8x128xf32> to vector<8x128xbf16>
    %c0_28 = arith.constant 0 : index
    %c0_29 = arith.constant 0 : index
    %34 = vector.load %arg6[%c0_28, %c0_29] : memref<128x128xbf16, #tpu.memory_space<vmem>>, vector<128x128xbf16>
    %cst_30 = arith.constant dense<0.000000e+00> : vector<8x128xf32>
    %35 = tpu.matmul %33, %34, %cst_30 {dimension_numbers = #tpu.dot_dimension_numbers<[1], [0], [0], [1], [0, 0, 1, 1], [], []>} : vector<8x128xbf16>, vector<128x128xbf16>, vector<8x128xf32> -> vector<8x128xf32>
    %36 = vector.extract_strided_slice %6 {offsets = [2, 0], sizes = [1, 128], strides = [1, 1]} : vector<3x128xf32> to vector<1x128xf32>
    %37 = vector.broadcast %36 : vector<1x128xf32> to vector<8x128xf32>
    %38 = arith.addf %35, %37 : vector<8x128xf32>
    %c0_31 = arith.constant 0 : index
    %c0_32 = arith.constant 0 : index
    %39 = vector.load %arg9[%c0_31, %c0_32] : memref<8x128xf32, #tpu.memory_space<vmem>>, vector<8x128xf32>
    tpu.vector_store %arg9[%c0_31, %c0_32], %38 {strides = array<i32>} : memref<8x128xf32, #tpu.memory_space<vmem>>, vector<8x128xf32>,
    return
  }
  func.func @transform_0(%arg0: i32) -> (i32, i32, i32) {
    %c0_i32 = arith.constant 0 : i32
    %c0_i32_0 = arith.constant 0 : i32
    %c0_i32_1 = arith.constant 0 : i32
    return %arg0, %c0_i32, %c0_i32_0 : i32, i32, i32
  }
  func.func @transform_1(%arg0: i32) -> (i32, i32, i32) {
    %c0_i32 = arith.constant 0 : i32
    %c0_i32_0 = arith.constant 0 : i32
    %c0_i32_1 = arith.constant 0 : i32
    return %arg0, %c0_i32, %c0_i32_0 : i32, i32, i32
  }
  func.func @transform_2(%arg0: i32) -> (i32, i32, i32) {
    %c0_i32 = arith.constant 0 : i32
    %c0_i32_0 = arith.constant 0 : i32
    %c0_i32_1 = arith.constant 0 : i32
    return %arg0, %c0_i32, %c0_i32_0 : i32, i32, i32
  }
  func.func @transform_3(%arg0: i32) -> (i32, i32, i32) {
    %c0_i32 = arith.constant 0 : i32
    %c0_i32_0 = arith.constant 0 : i32
    %c0_i32_1 = arith.constant 0 : i32
    %c0_i32_2 = arith.constant 0 : i32
    return %c0_i32, %c0_i32_0, %c0_i32_1 : i32, i32, i32
  }
  func.func @transform_4(%arg0: i32) -> (i32, i32) {
    %c0_i32 = arith.constant 0 : i32
    %c0_i32_0 = arith.constant 0 : i32
    %c0_i32_1 = arith.constant 0 : i32
    return %c0_i32, %c0_i32_0 : i32, i32
  }
  func.func @transform_5(%arg0: i32) -> (i32, i32) {
    %c0_i32 = arith.constant 0 : i32
    %c0_i32_0 = arith.constant 0 : i32
    %c0_i32_1 = arith.constant 0 : i32
    return %c0_i32, %c0_i32_0 : i32, i32
  }
  func.func @transform_6(%arg0: i32) -> (i32, i32) {
    %c0_i32 = arith.constant 0 : i32
    %c0_i32_0 = arith.constant 0 : i32
    %c0_i32_1 = arith.constant 0 : i32
    return %c0_i32, %c0_i32_0 : i32, i32
  }
  func.func @transform_7(%arg0: i32) -> (i32, i32) {
    %c0_i32 = arith.constant 0 : i32
    %c0_i32_0 = arith.constant 0 : i32
    return %arg0, %c0_i32 : i32, i32
  }
  func.func @transform_8(%arg0: i32) -> (i32, i32) {
    %c0_i32 = arith.constant 0 : i32
    %c0_i32_0 = arith.constant 0 : i32
    return %arg0, %c0_i32 : i32, i32
  }
}

</mosaic_0001>

<bundles_post_ra>
// kernel: net_forward.1
= control target key start
LH: loop header
LB: loop body
LE: loop exit
PB: predicated region body
PF: predicated region fallthrough
CT: control target
= control target key end

     0   :  { %14 = vsyncpa [#allocation3], 0  ;;  %s1561_s0 = inlined_call_operand.hbm [shape: f32[8,16,32], index: 0, kind: input, shape index: {}]   ;;  %s1562_s1 = inlined_call_operand.hbm [shape: f32[8,16,32], index: 1, kind: input, shape index: {}]   ;;  %s1563_s2 = inlined_call_operand.hbm [shape: f32[8,16,32], index: 2, kind: input, shape index: {}]   ;;  %s1564_s3 = inlined_call_operand.hbm [shape: bf16[3,32,128], index: 3, kind: input, shape index: {}]   ;;  %s1565_s4 = inlined_call_operand.hbm [shape: bf16[128,128], index: 4, kind: input, shape index: {}]   ;;  %s1566_s5 = inlined_call_operand.hbm [shape: bf16[128,128], index: 5, kind: input, shape index: {}]   ;;  %s1567_s6 = inlined_call_operand.vmem [shape: f32[3,128], index: 6, kind: input, shape index: {}]   ;;  %s1568_s7 = inlined_call_operand.hbm [shape: f32[8,128], index: 7, kind: output, shape index: {0}]   ;;  %s1569_s8 = inlined_call_operand.hbm [shape: f32[8,128], index: 8, kind: output, shape index: {1}]  }
   0x1   :  { %15 = vsyncpa [#allocation6], 0 }
   0x2   :  { %16 = vsyncpa [#allocation9], 0 }
   0x3   :  { %17 = vsyncpa [#allocation12], 0 }
   0x4   :  { %18 = vsyncpa [#allocation4], 0 }
   0x5   :  { %19 = vsyncpa [#allocation15], 0  ;;  %s1260_s27 = smov [#allocation5]   ;;  %s1261_s29 = smov [#allocation8]  }
   0x6   :  { %s37_s28 = sshll.u32 %s1260_s27, 4  ;;  %s61_s30 = sshll.u32 %s1261_s29, 4  ;;  %s38_s28 = int_to_ptr.vmem [resolvable:$true] %s37_s28  ;;  %s1319_s30 = int_to_ptr.vmem [resolvable:$true] %s61_s30 }
   0x7   :  { %s1072_s11 = scalar_lea.hbm %s1562_s1, 2048 }
   0x8   :  { %p1073_p0 = scmp.ne.s32.totalorder %s1562_s1, %s1072_s11  ;;  %p1076_p1 = scmp.lt.u32.totalorder %s1072_s11, %s1562_s1 }
   0xa   :  { %p1078_p2 = pnand %p1076_p1, %p1073_p0 }
   0xc   :  { %1081 = shalt.err (!%p1078_p2)
}
   0xd   :  { %s1082_s16 = scalar_lea.vmem %s38_s28, 2048  ;;  %p1087_p4 = scmp.lt.s32.totalorder %s38_s28, %s38_s28 }
   0xe   :  { %p1083_p3 = scmp.ne.s32.totalorder %s38_s28, %s1082_s16  ;;  %p1088_p5 = scmp.lt.s32.totalorder %s1082_s16, %s1082_s16 }
  0x10   :  { %p1089_p6 = por %p1088_p5, %p1087_p4 }
  0x12   :  { %p1090_p7 = pnand %p1089_p6, %p1083_p3 }
  0x14   :  { %1093 = shalt.err (!%p1090_p7)
}
  0x15   :  { %s1262_s17 = smov 128   ;;  %s1263_s18 = smov 8  }
  0x16   :  { %43 = dma.hbm_to_vmem [thread:$0]  %s1562_s1, 2048, %s38_s28, [#allocation6], %s1262_s17, %s1262_s17, %s1263_s18  }
  0x17   :  { %s1094_s23 = scalar_lea.hbm %s1564_s3, 768 }
  0x18   :  { %p1095_p8 = scmp.ne.s32.totalorder %s1564_s3, %s1094_s23  ;;  %p1098_p9 = scmp.lt.u32.totalorder %s1094_s23, %s1564_s3 }
  0x1a   :  { %p1100_p10 = pnand %p1098_p9, %p1095_p8 }
  0x1c   :  { %1103 = shalt.err (!%p1100_p10)
}
  0x1d   :  { %s1104_s29 = scalar_lea.vmem %s1319_s30, 768  ;;  %p1109_p12 = scmp.lt.s32.totalorder %s1319_s30, %s1319_s30 }
  0x1e   :  { %p1105_p11 = scmp.ne.s32.totalorder %s1319_s30, %s1104_s29  ;;  %p1110_p13 = scmp.lt.s32.totalorder %s1104_s29, %s1104_s29 }
  0x20   :  { %p1111_p0 = por %p1110_p13, %p1109_p12 }
  0x22   :  { %p1112_p1 = pnand %p1111_p0, %p1105_p11 }
  0x24   :  { %1115 = shalt.err (!%p1112_p1)
}
  0x25   :  { %s1264_s1 = smov 64   ;;  %s1265_s28 = smov 4  }
  0x26   :  { %67 = dma.hbm_to_vmem [thread:$0]  %s1564_s3, 768, %s1319_s30, [#allocation9], %s1264_s1, %s1264_s1, %s1265_s28  }
  0x27   :  { %s1266_s11 = smov [#allocation2]   ;;  %s1267_s13 = smov [#allocation7]  }
  0x28   :  { %s25_s12 = sshll.u32 %s1266_s11, 4  ;;  %s49_s14 = sshll.u32 %s1267_s13, 4  ;;  %s26_s12 = int_to_ptr.vmem [resolvable:$true] %s25_s12  ;;  %s1356_s14 = int_to_ptr.vmem [resolvable:$true] %s49_s14 }
  0x29   :  { %s1116_s19 = scalar_lea.hbm %s1561_s0, 2048 }
  0x2a   :  { %p1117_p2 = scmp.ne.s32.totalorder %s1561_s0, %s1116_s19  ;;  %p1120_p3 = scmp.lt.u32.totalorder %s1116_s19, %s1561_s0 }
  0x2c   :  { %p1122_p4 = pnand %p1120_p3, %p1117_p2 }
  0x2e   :  { %1125 = shalt.err (!%p1122_p4)
}
  0x2f   :  { %s1126_s3 = scalar_lea.vmem %s26_s12, 2048  ;;  %p1131_p6 = scmp.lt.s32.totalorder %s26_s12, %s26_s12 }
  0x30   :  { %p1127_p5 = scmp.ne.s32.totalorder %s26_s12, %s1126_s3  ;;  %p1132_p7 = scmp.lt.s32.totalorder %s1126_s3, %s1126_s3 }
  0x32   :  { %p1133_p8 = por %p1132_p7, %p1131_p6 }
  0x34   :  { %p1134_p9 = pnand %p1133_p8, %p1127_p5 }
  0x36   :  { %1137 = shalt.err (!%p1134_p9)
}
  0x37   :  { %31 = dma.hbm_to_vmem [thread:$0]  %s1561_s0, 2048, %s26_s12, [#allocation3], %s1262_s17, %s1262_s17, %s1263_s18  }
  0x38   :  { %s1138_s27 = scalar_lea.hbm %s1563_s2, 2048 }
  0x39   :  { %p1139_p10 = scmp.ne.s32.totalorder %s1563_s2, %s1138_s27  ;;  %p1142_p11 = scmp.lt.u32.totalorder %s1138_s27, %s1563_s2 }
  0x3b   :  { %p1144_p12 = pnand %p1142_p11, %p1139_p10 }
  0x3d   :  { %1147 = shalt.err (!%p1144_p12)
}
  0x3e   :  { %s1148_s13 = scalar_lea.vmem %s1356_s14, 2048  ;;  %p1153_p0 = scmp.lt.s32.totalorder %s1356_s14, %s1356_s14 }
  0x3f   :  { %p1149_p13 = scmp.ne.s32.totalorder %s1356_s14, %s1148_s13  ;;  %p1154_p1 = scmp.lt.s32.totalorder %s1148_s13, %s1148_s13 }
  0x41   :  { %p1155_p2 = por %p1154_p1, %p1153_p0 }
  0x43   :  { %p1156_p3 = pnand %p1155_p2, %p1149_p13 }
  0x45   :  { %1159 = shalt.err (!%p1156_p3)
}
  0x46   :  { %55 = dma.hbm_to_vmem [thread:$0]  %s1563_s2, 2048, %s1356_s14, [#allocation6], %s1262_s17, %s1262_s17, %s1263_s18  }
  0x47   :  { %s1268_s15 = smov [#allocation10]   ;;  %s1269_s19 = smov [#allocation11]  }
  0x48   :  { %s73_s16 = sshll.u32 %s1268_s15, 4  ;;  %s85_s20 = sshll.u32 %s1269_s19, 4  ;;  %s74_s16 = int_to_ptr.vmem [resolvable:$true] %s73_s16  ;;  %s1393_s20 = int_to_ptr.vmem [resolvable:$true] %s85_s20 }
  0x49   :  { %s1160_s23 = scalar_lea.hbm %s1565_s4, 1024 }
  0x4a   :  { %p1161_p4 = scmp.ne.s32.totalorder %s1565_s4, %s1160_s23  ;;  %p1164_p5 = scmp.lt.u32.totalorder %s1160_s23, %s1565_s4 }
  0x4c   :  { %p1166_p6 = pnand %p1164_p5, %p1161_p4 }
  0x4e   :  { %1169 = shalt.err (!%p1166_p6)
}
  0x4f   :  { %s1170_s2 = scalar_lea.vmem %s74_s16, 1024  ;;  %p1175_p8 = scmp.lt.s32.totalorder %s74_s16, %s74_s16 }
  0x50   :  { %p1171_p7 = scmp.ne.s32.totalorder %s74_s16, %s1170_s2  ;;  %p1176_p9 = scmp.lt.s32.totalorder %s1170_s2, %s1170_s2 }
  0x52   :  { %p1177_p10 = por %p1176_p9, %p1175_p8 }
  0x54   :  { %p1178_p11 = pnand %p1177_p10, %p1171_p7 }
  0x56   :  { %1181 = shalt.err (!%p1178_p11)
}
  0x57   :  { %79 = dma.hbm_to_vmem [thread:$0]  %s1565_s4, 1024, %s74_s16, [#allocation9], %s1264_s1, %s1264_s1, %s1265_s28  }
  0x58   :  { %s1182_s27 = scalar_lea.hbm %s1566_s5, 1024 }
  0x59   :  { %p1183_p12 = scmp.ne.s32.totalorder %s1566_s5, %s1182_s27  ;;  %p1186_p13 = scmp.lt.u32.totalorder %s1182_s27, %s1566_s5 }
  0x5b   :  { %p1188_p0 = pnand %p1186_p13, %p1183_p12 }
  0x5d   :  { %1191 = shalt.err (!%p1188_p0)
}
  0x5e   :  { %s1192_s13 = scalar_lea.vmem %s1393_s20, 1024  ;;  %p1197_p2 = scmp.lt.s32.totalorder %s1393_s20, %s1393_s20 }
  0x5f   :  { %p1193_p1 = scmp.ne.s32.totalorder %s1393_s20, %s1192_s13  ;;  %p1198_p3 = scmp.lt.s32.totalorder %s1192_s13, %s1192_s13 }
  0x61   :  { %p1199_p4 = por %p1198_p3, %p1197_p2 }
  0x63   :  { %p1200_p5 = pnand %p1199_p4, %p1193_p1 }
  0x65   :  { %1203 = shalt.err (!%p1200_p5)
}
  0x66   :  { %91 = dma.hbm_to_vmem [thread:$0]  %s1566_s5, 1024, %s1393_s20, [#allocation12], %s1264_s1, %s1264_s1, %s1265_s28  }
  0x67   :  { %1248 = dma.done.wait [#allocation3], 2048  }
  0x68   :  { %1249 = vsyncadd [#allocation3], 4294965248 }
  0x69   :  { %1250 = dma.done.wait [#allocation6], 4096  }
  0x6a   :  { %1251 = vsyncadd [#allocation6], 4294963200 }
  0x6b   :  { %1252 = dma.done.wait [#allocation9], 1792  }
  0x6c   :  { %1253 = vsyncadd [#allocation9], 4294965504 }
  0x6d   :  { %1254 = dma.done.wait [#allocation12], 1024  }
  0x6e   :  { %1255 = vsyncadd [#allocation12], 4294966272  ;;  %v1270_v0 = vmov 0.0   ;;  %vm1271_vm0 = vmmov 0   ;;  %v1050_v1 = vld [vmem:[#allocation8 + $0x10] sm:$0xff]   ;;  %v1051_v2 = vld [vmem:[#allocation8] sm:$0xff]  }
  0x6f   :  { %972 = vmatprep.subr.bf16.mxu0 %v1270_v0  ;;  %980 = vmatprep.subr.bf16.mxu1 %v1270_v0  ;;  %v1052_v3 = vld [vmem:[#allocation8 + $0x18] sm:$0xff]   ;;  %vm129_vm1 = vcmask 261120   ;;  %v1053_v4 = vld [vmem:[#allocation8 + $0x8] sm:$0xff]   ;;  %v202_v5 = vld [vmem:[#allocation5] sm:$0xff]  ;;  %vm420_vm2 = vcmask 1041409   ;;  %vm422_vm3 = vcmask 1042434  }
  0x70   :  { %976 = vmatprep.mubr.msk.bf16.mxu0 %vm1271_vm0, %v1270_v0  ;;  %984 = vmatprep.mubr.msk.bf16.mxu1 %vm1271_vm0, %v1270_v0  ;;  %v203_v6 = vld [vmem:[#allocation5 + $0x8] sm:$0xff]  ;;  %v204_v7 = vld [vmem:[#allocation5 + $0x10] sm:$0xff]  ;;  %v205_v8 = vld [vmem:[#allocation5 + $0x18] sm:$0xff]  ;;  %v218_v11 = vsel %vm129_vm1, %v202_v5, 0.0  ;;  %vm424_vm4 = vcmask 1043459   ;;  %vm426_vm5 = vcmask 1044484  }
  0x71   :  { %973 = vmatpush3.bf16.msra.mxu0 %v1050_v1  ;;  %981 = vmatpush3.bf16.msra.mxu1 %v1051_v2  ;;  %v206_v9 = vld [vmem:[#allocation5 + $0x20] sm:$0xff]  ;;  %v207_v10 = vld [vmem:[#allocation5 + $0x28] sm:$0xff]  ;;  %v219_v12 = vsel %vm129_vm1, %v203_v6, 0.0  ;;  %v227_v13 = vsel %vm129_vm1, %v204_v7, 0.0  ;;  %v208_v14 = vld [vmem:[#allocation5 + $0x30] sm:$0xff]  ;;  %v228_v18 = vsel %vm129_vm1, %v205_v8, 0.0 }
  0x72   :  { %974 = vmatprep.subr.bf16.mxu0 %v1270_v0  ;;  %982 = vmatprep.subr.bf16.mxu1 %v1270_v0  ;;  %v209_v15 = vld [vmem:[#allocation5 + $0x38] sm:$0xff]  ;;  %v210_v16 = vld [vmem:[#allocation5 + $0x40] sm:$0xff]  ;;  %v220_v17 = vadd.f32 %v219_v12, %v218_v11  ;;  %v236_v19 = vsel %vm129_vm1, %v206_v9, 0.0  ;;  %v237_v20 = vsel %vm129_vm1, %v207_v10, 0.0  ;;  %v211_v21 = vld [vmem:[#allocation5 + $0x48] sm:$0xff]  ;;  %v229_v24 = vadd.f32 %v228_v18, %v227_v13 }
  0x73   :  { %v212_v22 = vld [vmem:[#allocation5 + $0x50] sm:$0xff]  ;;  %v213_v23 = vld [vmem:[#allocation5 + $0x58] sm:$0xff]  ;;  %v238_v25 = vadd.f32 %v237_v20, %v236_v19  ;;  %v245_v26 = vsel %vm129_vm1, %v208_v14, 0.0  ;;  %v246_v27 = vsel %vm129_vm1, %v209_v15, 0.0  ;;  %v214_v28 = vld [vmem:[#allocation5 + $0x60] sm:$0xff]  ;;  %v254_v31 = vsel %vm129_vm1, %v210_v16, 0.0 }
  0x74   :  { %v221_v29 = vrot.slane %v220_v17, 4  ;;  %v247_v30 = vadd.f32 %v246_v27, %v245_v26  ;;  %v255_v32 = vsel %vm129_vm1, %v211_v21, 0.0  ;;  %v215_v33 = vld [vmem:[#allocation5 + $0x68] sm:$0xff]  ;;  %v216_v34 = vld [vmem:[#allocation5 + $0x70] sm:$0xff]  ;;  %v230_v35 = vrot.slane %v229_v24, 4  ;;  %v217_v43 = vld [vmem:[#allocation5 + $0x78] sm:$0xff] }
  0x75   :  { %975 = vmatpush3.bf16.msra.mxu0 %v1052_v3  ;;  %983 = vmatpush3.bf16.msra.mxu1 %v1053_v4  ;;  %v239_v36 = vrot.slane %v238_v25, 4  ;;  %v256_v37 = vadd.f32 %v255_v32, %v254_v31  ;;  %v263_v38 = vsel %vm129_vm1, %v212_v22, 0.0  ;;  %v264_v41 = vsel %vm129_vm1, %v213_v23, 0.0  ;;  %v114_v26 = vld [vmem:[#allocation2 + $0x8] sm:$0xff]  ;;  %v115_v31 = vld [vmem:[#allocation2 + $0x10] sm:$0xff] }
  0x76   :  { %988 = vmatprep.subr.bf16.mxu0 %v1270_v0  ;;  %996 = vmatprep.subr.bf16.mxu1 %v1270_v0  ;;  %v222_v39 = vadd.f32 %v221_v29, %v220_v17  ;;  %v248_v40 = vrot.slane %v247_v30, 4  ;;  %v272_v42 = vsel %vm129_vm1, %v214_v28, 0.0  ;;  %v231_v44 = vadd.f32 %v230_v35, %v229_v24 }
  0x77   :  { %v240_v45 = vadd.f32 %v239_v36, %v238_v25  ;;  %v257_v46 = vrot.slane %v256_v37, 4  ;;  %v265_v47 = vadd.f32 %v264_v41, %v263_v38  ;;  %v273_v50 = vsel %vm129_vm1, %v215_v33, 0.0  ;;  %v113_v25 = vld [vmem:[#allocation2] sm:$0xff]  ;;  %v116_v36 = vld [vmem:[#allocation2 + $0x18] sm:$0xff] }
  0x78   :  { %v223_v48 = vrot.slane %v222_v39, 2  ;;  %v249_v49 = vadd.f32 %v248_v40, %v247_v30  ;;  %v281_v51 = vsel %vm129_vm1, %v216_v34, 0.0  ;;  %v232_v52 = vrot.slane %v231_v44, 2  ;;  %v117_v40 = vld [vmem:[#allocation2 + $0x20] sm:$0xff] }
  0x79   :  { %v241_v53 = vrot.slane %v240_v45, 2  ;;  %v258_v54 = vadd.f32 %v257_v46, %v256_v37  ;;  %v266_v55 = vrot.slane %v265_v47, 4  ;;  %v274_v58 = vadd.f32 %v273_v50, %v272_v42  ;;  %v119_v50 = vld [vmem:[#allocation2 + $0x30] sm:$0xff] }
  0x7a   :  { %v224_v56 = vadd.f32 %v223_v48, %v222_v39  ;;  %v250_v57 = vrot.slane %v249_v49, 2  ;;  %v282_v59 = vsel %vm129_vm1, %v217_v43, 0.0  ;;  %v233_v60 = vadd.f32 %v232_v52, %v231_v44  ;;  %v121_v52 = vld [vmem:[#allocation2 + $0x40] sm:$0xff] }
  0x7b   :  { %v242_v61 = vadd.f32 %v241_v53, %v240_v45  ;;  %v259_v62 = vrot.slane %v258_v54, 2  ;;  %v267_v63 = vadd.f32 %v266_v55, %v265_v47  ;;  %v275_v3 = vrot.slane %v274_v58, 4  ;;  %v118_v45 = vld [vmem:[#allocation2 + $0x28] sm:$0xff] }
  0x7c   :  { %v225_v1 = vrot.slane %v224_v56, 1  ;;  %v251_v2 = vadd.f32 %v250_v57, %v249_v49  ;;  %v283_v4 = vadd.f32 %v282_v59, %v281_v51  ;;  %v234_v5 = vrot.slane %v233_v60, 1  ;;  %v120_v51 = vld [vmem:[#allocation2 + $0x38] sm:$0xff] }
  0x7d   :  { %v243_v6 = vrot.slane %v242_v61, 1  ;;  %v260_v7 = vadd.f32 %v259_v62, %v258_v54  ;;  %v268_v8 = vrot.slane %v267_v63, 2  ;;  %v276_v11 = vadd.f32 %v275_v3, %v274_v58  ;;  %v123_v62 = vld [vmem:[#allocation2 + $0x50] sm:$0xff] }
  0x7e   :  { %v226_v9 = vadd.f32 %v225_v1, %v224_v56  ;;  %v252_v10 = vrot.slane %v251_v2, 1  ;;  %v284_v12 = vrot.slane %v283_v4, 4  ;;  %vm428_vm6 = vcmask 1045509  }
  0x7f   :  { %v235_v13 = vadd.f32 %v234_v5, %v233_v60  ;;  %v244_v14 = vadd.f32 %v243_v6, %v242_v61  ;;  %v261_v15 = vrot.slane %v260_v7, 1  ;;  %v269_v16 = vadd.f32 %v268_v8, %v267_v63  ;;  %v122_v61 = vld [vmem:[#allocation2 + $0x48] sm:$0xff] }
  0x80   :  { %v253_v17 = vadd.f32 %v252_v10, %v251_v2  ;;  %v277_v18 = vrot.slane %v276_v11, 2  ;;  %v285_v19 = vadd.f32 %v284_v12, %v283_v4  ;;  %v391_v20 = vpack.c.bf16 %v226_v9, %v226_v9 }
  0x81   :  { %v262_v21 = vadd.f32 %v261_v15, %v260_v7  ;;  %v270_v22 = vrot.slane %v269_v16, 1  ;;  %v392_v23 = vpack.c.bf16 %v235_v13, %v235_v13  ;;  %v393_v24 = vpack.c.bf16 %v244_v14, %v244_v14  ;;  %v124_v7 = vld [vmem:[#allocation2 + $0x58] sm:$0xff] }
  0x82   :  { %vm430_vm7 = vcmask 1046534   ;;  %v278_v27 = vadd.f32 %v277_v18, %v276_v11  ;;  %v286_v28 = vrot.slane %v285_v19, 2  ;;  %v394_v29 = vpack.c.bf16 %v253_v17, %v253_v17  ;;  %v126_v17 = vld [vmem:[#allocation2 + $0x68] sm:$0xff] }
  0x83   :  { %v412_v30 = vunpack.c.l.b16 %v391_v20  ;;  %v271_v32 = vadd.f32 %v270_v22, %v269_v16  ;;  %v395_v33 = vpack.c.bf16 %v262_v21, %v262_v21  ;;  %v413_v34 = vunpack.c.l.b16 %v392_v23  ;;  %v125_v16 = vld [vmem:[#allocation2 + $0x60] sm:$0xff] }
  0x84   :  { %v414_v35 = vunpack.c.l.b16 %v393_v24  ;;  %vm432_vm8 = vcmask 1047559   ;;  %v279_v37 = vrot.slane %v278_v27, 1  ;;  %v287_v38 = vadd.f32 %v286_v28, %v285_v19  ;;  %v1054_v20 = vld [vmem:[#allocation8 + $0x20] sm:$0xff]  }
  0x85   :  { %v415_v39 = vunpack.c.l.b16 %v394_v29  ;;  %v130_v41 = vsel %vm129_vm1, %v113_v25, 0.0  ;;  %v396_v42 = vpack.c.bf16 %v271_v32, %v271_v32  ;;  %v416_v43 = vunpack.c.l.b16 %v395_v33 }
  0x86   :  { %v421_v44 = vsel %vm420_vm2, %v413_v34, %v412_v30  ;;  %v131_v46 = vsel %vm129_vm1, %v114_v26, 0.0  ;;  %v280_v47 = vadd.f32 %v279_v37, %v278_v27  ;;  %v288_v48 = vrot.slane %v287_v38, 1  ;;  %v127_v30 = vld [vmem:[#allocation2 + $0x70] sm:$0xff]  ;;  %v128_v34 = vld [vmem:[#allocation2 + $0x78] sm:$0xff] }
  0x87   :  { %v423_v49 = vsel %vm422_vm3, %v414_v35, %v421_v44  ;;  %v132_v53 = vadd.f32 %v131_v46, %v130_v41  ;;  %v417_v54 = vunpack.c.l.b16 %v396_v42  ;;  %v139_v56 = vsel %vm129_vm1, %v115_v31, 0.0 }
  0x88   :  { %v425_v55 = vsel %vm424_vm4, %v415_v39, %v423_v49  ;;  %v140_v57 = vsel %vm129_vm1, %v116_v36, 0.0  ;;  %v289_v58 = vadd.f32 %v288_v48, %v287_v38  ;;  %v397_v59 = vpack.c.bf16 %v280_v47, %v280_v47  ;;  %v1055_v47 = vld [vmem:[#allocation8 + $0x28] sm:$0xff]  }
  0x89   :  { %v427_v60 = vsel %vm426_vm5, %v416_v43, %v425_v55  ;;  %v133_v63 = vrot.slane %v132_v53, 4  ;;  %v141_v2 = vadd.f32 %v140_v57, %v139_v56  ;;  %v148_v3 = vsel %vm129_vm1, %v117_v40, 0.0 }
  0x8a   :  { %v429_v1 = vsel %vm428_vm6, %v417_v54, %v427_v60  ;;  %v149_v4 = vsel %vm129_vm1, %v118_v45, 0.0  ;;  %v398_v5 = vpack.c.bf16 %v289_v58, %v289_v58  ;;  %v418_v6 = vunpack.c.l.b16 %v397_v59 }
  0x8b   :  { %v134_v8 = vadd.f32 %v133_v63, %v132_v53  ;;  %v150_v9 = vadd.f32 %v149_v4, %v148_v3  ;;  %v142_v10 = vrot.slane %v141_v2, 4  ;;  %v157_v11 = vsel %vm129_vm1, %v119_v50, 0.0 }
  0x8c   :  { %v158_v12 = vsel %vm129_vm1, %v120_v51, 0.0  ;;  %v166_v13 = vsel %vm129_vm1, %v121_v52, 0.0  ;;  %v419_v14 = vunpack.c.l.b16 %v398_v5  ;;  %v431_v15 = vsel %vm430_vm7, %v418_v6, %v429_v1  ;;  %v290_v5 = vld [vmem:[#allocation7] sm:$0xff] }
  0x8d   :  { %v135_v18 = vrot.slane %v134_v8, 2  ;;  %v151_v19 = vrot.slane %v150_v9, 4  ;;  %v143_v21 = vadd.f32 %v142_v10, %v141_v2  ;;  %v159_v22 = vadd.f32 %v158_v12, %v157_v11 }
  0x8e   :  { %v167_v23 = vsel %vm129_vm1, %v122_v61, 0.0  ;;  %v175_v24 = vsel %vm129_vm1, %v123_v62, 0.0  ;;  %v433_v25 = vsel %vm432_vm8, %v419_v14, %v431_v15  ;;  %v176_v33 = vsel %vm129_vm1, %v124_v7, 0.0  ;;  %v291_v14 = vld [vmem:[#allocation7 + $0x8] sm:$0xff] }
  0x8f   :  { %v136_v26 = vadd.f32 %v135_v18, %v134_v8  ;;  %v152_v27 = vadd.f32 %v151_v19, %v150_v9  ;;  %v168_v28 = vadd.f32 %v167_v23, %v166_v13  ;;  %v434_v29 = vpack.c.b16 %v433_v25, %v433_v25  ;;  %v292_v23 = vld [vmem:[#allocation7 + $0x10] sm:$0xff] }
  0x90   :  { %v144_v31 = vrot.slane %v143_v21, 2  ;;  %v160_v32 = vrot.slane %v159_v22, 4  ;;  %v177_v38 = vadd.f32 %v176_v33, %v175_v24  ;;  %v184_v41 = vsel %vm129_vm1, %v125_v16, 0.0  ;;  %v293_v24 = vld [vmem:[#allocation7 + $0x18] sm:$0xff] }
  0x91   :  { %v137_v35 = vrot.slane %v136_v26, 1  ;;  %v153_v36 = vrot.slane %v152_v27, 2  ;;  %v169_v37 = vrot.slane %v168_v28, 4  ;;  %977 = vmatmul.mubr.msk.bf16.vlgmr.msra.gmra.mrb[0].mxu0 %vm129_vm1, %v434_v29  ;;  %v185_v42 = vsel %vm129_vm1, %v126_v17, 0.0 }
  0x92   :  { %v145_v39 = vadd.f32 %v144_v31, %v143_v21  ;;  %v161_v40 = vadd.f32 %v160_v32, %v159_v22  ;;  %v178_v46 = vrot.slane %v177_v38, 4  ;;  %989 = vmatpush3.bf16.msra.mxu0 %v1054_v20  ;;  %992 = vmatprep.mubr.msk.bf16.mxu0 %vm1271_vm0, %v1270_v0  ;;  %v186_v50 = vadd.f32 %v185_v42, %v184_v41  ;;  %v294_v32 = vld [vmem:[#allocation7 + $0x20] sm:$0xff]  ;;  %v296_v42 = vld [vmem:[#allocation7 + $0x30] sm:$0xff] }
  0x93   :  { %v138_v43 = vadd.f32 %v137_v35, %v136_v26  ;;  %v154_v44 = vadd.f32 %v153_v36, %v152_v27  ;;  %v170_v45 = vadd.f32 %v169_v37, %v168_v28  ;;  %v193_v51 = vsel %vm129_vm1, %v127_v30, 0.0  ;;  %990 = vmatprep.subr.bf16.mxu0 %v1270_v0  ;;  %v295_v36 = vld [vmem:[#allocation7 + $0x28] sm:$0xff] }
  0x94   :  { %v146_v48 = vrot.slane %v145_v39, 1  ;;  %v162_v49 = vrot.slane %v161_v40, 2  ;;  %v179_v54 = vadd.f32 %v178_v46, %v177_v38  ;;  %v194_v55 = vsel %vm129_vm1, %v128_v34, 0.0  ;;  %v297_v46 = vld [vmem:[#allocation7 + $0x38] sm:$0xff] }
  0x95   :  { %v155_v52 = vrot.slane %v154_v44, 1  ;;  %v171_v53 = vrot.slane %v170_v45, 2  ;;  %v187_v58 = vrot.slane %v186_v50, 4  ;;  %v195_v59 = vadd.f32 %v194_v55, %v193_v51  ;;  %v298_v51 = vld [vmem:[#allocation7 + $0x40] sm:$0xff]  ;;  %v299_v55 = vld [vmem:[#allocation7 + $0x48] sm:$0xff] }
  0x96   :  { %v147_v56 = vadd.f32 %v146_v48, %v145_v39  ;;  %v163_v57 = vadd.f32 %v162_v49, %v161_v40  ;;  %v180_v62 = vrot.slane %v179_v54, 2  ;;  %v379_v63 = vpack.c.bf16 %v138_v43, %v138_v43  ;;  %991 = vmatpush3.bf16.msra.mxu0 %v1055_v47 }
  0x97   :  { %v156_v60 = vadd.f32 %v155_v52, %v154_v44  ;;  %v172_v61 = vadd.f32 %v171_v53, %v170_v45  ;;  %v188_v2 = vadd.f32 %v187_v58, %v186_v50  ;;  %v196_v3 = vrot.slane %v195_v59, 4  ;;  %1016 = vmatprep.subr.bf16.mxu0 %v1270_v0 }
  0x98   :  { %v164_v1 = vrot.slane %v163_v57, 1  ;;  %v380_v4 = vpack.c.bf16 %v147_v56, %v147_v56  ;;  %v181_v7 = vadd.f32 %v180_v62, %v179_v54  ;;  %v498_v9 = vunpack.c.l.b16 %v379_v63  ;;  %v300_v63 = vld [vmem:[#allocation7 + $0x50] sm:$0xff] }
  0x99   :  { %v173_v6 = vrot.slane %v172_v61, 1  ;;  %v381_v8 = vpack.c.bf16 %v156_v60, %v156_v60  ;;  %v189_v11 = vrot.slane %v188_v2, 2  ;;  %v197_v12 = vadd.f32 %v196_v3, %v195_v59 }
  0x9a   :  { %v165_v10 = vadd.f32 %v164_v1, %v163_v57  ;;  %v499_v13 = vunpack.c.l.b16 %v380_v4  ;;  %v182_v16 = vrot.slane %v181_v7, 1  ;;  %v306_v18 = vsel %vm129_vm1, %v290_v5, 0.0  ;;  %v301_v1 = vld [vmem:[#allocation7 + $0x58] sm:$0xff] }
  0x9b   :  { %v174_v15 = vadd.f32 %v173_v6, %v172_v61  ;;  %v500_v17 = vunpack.c.l.b16 %v381_v8  ;;  %v190_v19 = vadd.f32 %v189_v11, %v188_v2  ;;  %v198_v20 = vrot.slane %v197_v12, 2 }
  0x9c   :  { %v382_v21 = vpack.c.bf16 %v165_v10, %v165_v10  ;;  %v506_v22 = vsel %vm420_vm2, %v499_v13, %v498_v9  ;;  %v183_v25 = vadd.f32 %v182_v16, %v181_v7  ;;  %v307_v28 = vsel %vm129_vm1, %v291_v14, 0.0  ;;  %v302_v10 = vld [vmem:[#allocation7 + $0x60] sm:$0xff]  ;;  %v303_v16 = vld [vmem:[#allocation7 + $0x68] sm:$0xff] }
  0x9d   :  { %v383_v26 = vpack.c.bf16 %v174_v15, %v174_v15  ;;  %v507_v27 = vsel %vm422_vm3, %v500_v17, %v506_v22  ;;  %v191_v29 = vrot.slane %v190_v19, 1  ;;  %v199_v30 = vadd.f32 %v198_v20, %v197_v12  ;;  %v1056_v20 = vld [vmem:[#allocation10] sm:$0xff]  }
  0x9e   :  { %v501_v31 = vunpack.c.l.b16 %v382_v21  ;;  %v308_v33 = vadd.f32 %v307_v28, %v306_v18  ;;  %v384_v34 = vpack.c.bf16 %v183_v25, %v183_v25  ;;  %v315_v37 = vsel %vm129_vm1, %v292_v23, 0.0  ;;  %v304_v22 = vld [vmem:[#allocation7 + $0x70] sm:$0xff] }
  0x9f   :  { %v502_v35 = vunpack.c.l.b16 %v383_v26  ;;  %v316_v38 = vsel %vm129_vm1, %v293_v24, 0.0  ;;  %v192_v39 = vadd.f32 %v191_v29, %v190_v19  ;;  %v200_v40 = vrot.slane %v199_v30, 1  ;;  %v305_v26 = vld [vmem:[#allocation7 + $0x78] sm:$0xff] }
  0xa0   :  { %v508_v41 = vsel %vm424_vm4, %v501_v31, %v507_v27  ;;  %v309_v43 = vrot.slane %v308_v33, 4  ;;  %v503_v44 = vunpack.c.l.b16 %v384_v34  ;;  %v317_v47 = vadd.f32 %v316_v38, %v315_v37 }
  0xa1   :  { %v509_v45 = vsel %vm426_vm5, %v502_v35, %v508_v41  ;;  %v324_v48 = vsel %vm129_vm1, %v294_v32, 0.0  ;;  %v201_v49 = vadd.f32 %v200_v40, %v199_v30  ;;  %v385_v50 = vpack.c.bf16 %v192_v39, %v192_v39  ;;  %v1057_v39 = vld [vmem:[#allocation10 + $0x8] sm:$0xff]  }
  0xa2   :  { %v310_v52 = vadd.f32 %v309_v43, %v308_v33  ;;  %v325_v53 = vsel %vm129_vm1, %v295_v36, 0.0  ;;  %v510_v54 = vsel %vm428_vm6, %v503_v44, %v509_v45  ;;  %v318_v56 = vrot.slane %v317_v47, 4 }
  0xa3   :  { %v326_v57 = vadd.f32 %v325_v53, %v324_v48  ;;  %v333_v58 = vsel %vm129_vm1, %v296_v42, 0.0  ;;  %v386_v59 = vpack.c.bf16 %v201_v49, %v201_v49  ;;  %v504_v60 = vunpack.c.l.b16 %v385_v50 }
  0xa4   :  { %v311_v61 = vrot.slane %v310_v52, 2  ;;  %v334_v62 = vsel %vm129_vm1, %v297_v46, 0.0  ;;  %v319_v2 = vadd.f32 %v318_v56, %v317_v47  ;;  %v342_v5 = vsel %vm129_vm1, %v298_v51, 0.0  ;;  %v1058_v56 = vld [vmem:[#allocation10 + $0x10] sm:$0xff]  }
  0xa5   :  { %v327_v3 = vrot.slane %v326_v57, 4  ;;  %v335_v4 = vadd.f32 %v334_v62, %v333_v58  ;;  %v505_v6 = vunpack.c.l.b16 %v386_v59  ;;  %v511_v7 = vsel %vm430_vm7, %v504_v60, %v510_v54 }
  0xa6   :  { %v312_v8 = vadd.f32 %v311_v61, %v310_v52  ;;  %v343_v9 = vsel %vm129_vm1, %v299_v55, 0.0  ;;  %v320_v11 = vrot.slane %v319_v2, 2  ;;  %v351_v18 = vsel %vm129_vm1, %v300_v63, 0.0 }
  0xa7   :  { %v328_v12 = vadd.f32 %v327_v3, %v326_v57  ;;  %v336_v13 = vrot.slane %v335_v4, 4  ;;  %v344_v14 = vadd.f32 %v343_v9, %v342_v5  ;;  %v512_v15 = vsel %vm432_vm8, %v505_v6, %v511_v7  ;;  %v1059_v9 = vld [vmem:[#allocation10 + $0x18] sm:$0xff]  }
  0xa8   :  { %v313_v17 = vrot.slane %v312_v8, 1  ;;  %v352_v19 = vsel %vm129_vm1, %v301_v1, 0.0  ;;  %v513_v21 = vpack.c.b16 %v512_v15, %v512_v15  ;;  %v321_v23 = vadd.f32 %v320_v11, %v319_v2 }
  0xa9   :  { %v329_v24 = vrot.slane %v328_v12, 2  ;;  %v337_v25 = vadd.f32 %v336_v13, %v335_v4  ;;  %v345_v28 = vrot.slane %v344_v14, 4  ;;  %v353_v29 = vadd.f32 %v352_v19, %v351_v18 }
  0xaa   :  { %v314_v27 = vadd.f32 %v313_v17, %v312_v8  ;;  %v360_v30 = vsel %vm129_vm1, %v302_v10, 0.0  ;;  %985 = vmatmul.mubr.msk.bf16.vlgmr.msra.gmra.mrb[0].mxu1 %vm129_vm1, %v513_v21  ;;  %v322_v31 = vrot.slane %v321_v23, 1  ;;  %v361_v34 = vsel %vm129_vm1, %v303_v16, 0.0 }
  0xab   :  { %v330_v32 = vadd.f32 %v329_v24, %v328_v12  ;;  %v338_v33 = vrot.slane %v337_v25, 2  ;;  %v346_v35 = vadd.f32 %v345_v28, %v344_v14  ;;  %v354_v36 = vrot.slane %v353_v29, 4  ;;  %997 = vmatpush3.bf16.msra.mxu1 %v1056_v20  ;;  %1012 = vmatprep.mubr.msk.bf16.mxu1 %vm1271_vm0, %v1270_v0 }
  0xac   :  { %v362_v37 = vadd.f32 %v361_v34, %v360_v30  ;;  %v369_v38 = vsel %vm129_vm1, %v304_v22, 0.0  ;;  %v323_v40 = vadd.f32 %v322_v31, %v321_v23  ;;  %v370_v43 = vsel %vm129_vm1, %v305_v26, 0.0  ;;  %998 = vmatprep.subr.bf16.mxu1 %v1270_v0  ;;  %v1062_v34 = vld [vmem:[#allocation10 + $0x30] sm:$0xff]  }
  0xad   :  { %v331_v41 = vrot.slane %v330_v32, 1  ;;  %v339_v42 = vadd.f32 %v338_v33, %v337_v25  ;;  %v347_v44 = vrot.slane %v346_v35, 2  ;;  %v355_v45 = vadd.f32 %v354_v36, %v353_v29  ;;  %v1061_v33 = vld [vmem:[#allocation10 + $0x28] sm:$0xff]   ;;  %v1064_v36 = vld [vmem:[#allocation11] sm:$0xff]  }
  0xae   :  { %v363_v46 = vrot.slane %v362_v37, 4  ;;  %v371_v47 = vadd.f32 %v370_v43, %v369_v38  ;;  %v569_v50 = vpack.c.bf16 %v314_v27, %v314_v27  ;;  %v570_v51 = vpack.c.bf16 %v323_v40, %v323_v40  ;;  %v1066_v38 = vld [vmem:[#allocation11 + $0x10] sm:$0xff]   ;;  %v1068_v40 = vld [vmem:[#allocation11 + $0x20] sm:$0xff]  }
  0xaf   :  { %v332_v48 = vadd.f32 %v331_v41, %v330_v32  ;;  %v340_v49 = vrot.slane %v339_v42, 1  ;;  %v348_v52 = vadd.f32 %v347_v44, %v346_v35  ;;  %v356_v53 = vrot.slane %v355_v45, 2  ;;  %999 = vmatpush3.bf16.msra.mxu1 %v1057_v39  ;;  %v1060_v32 = vld [vmem:[#allocation10 + $0x20] sm:$0xff]   ;;  %v1063_v35 = vld [vmem:[#allocation10 + $0x38] sm:$0xff]   ;;  %v1069_v41 = vld [vmem:[#allocation11 + $0x28] sm:$0xff]  }
  0xb0   :  { %v364_v54 = vadd.f32 %v363_v46, %v362_v37  ;;  %v372_v55 = vrot.slane %v371_v47, 4  ;;  %v590_v59 = vunpack.c.l.b16 %v569_v50  ;;  %v591_v60 = vunpack.c.l.b16 %v570_v51  ;;  %1000 = vmatprep.subr.bf16.mxu1 %v1270_v0  ;;  %v1065_v37 = vld [vmem:[#allocation11 + $0x8] sm:$0xff]   ;;  %v1067_v39 = vld [vmem:[#allocation11 + $0x18] sm:$0xff]  }
  0xb1   :  { %v341_v57 = vadd.f32 %v340_v49, %v339_v42  ;;  %v571_v58 = vpack.c.bf16 %v332_v48, %v332_v48  ;;  %v349_v61 = vrot.slane %v348_v52, 1  ;;  %v357_v62 = vadd.f32 %v356_v53, %v355_v45 }
  0xb2   :  { %v365_v63 = vrot.slane %v364_v54, 2  ;;  %v373_v1 = vadd.f32 %v372_v55, %v371_v47  ;;  %v598_v4 = vsel %vm420_vm2, %v591_v60, %v590_v59  ;;  %v662_v51 = vlaneseq }
  0xb3   :  { %v572_v2 = vpack.c.bf16 %v341_v57, %v341_v57  ;;  %v592_v3 = vunpack.c.l.b16 %v571_v58  ;;  %v350_v5 = vadd.f32 %v349_v61, %v348_v52  ;;  %v358_v6 = vrot.slane %v357_v62, 1  ;;  %1001 = vmatpush3.bf16.msra.mxu1 %v1058_v56 }
  0xb4   :  { %v366_v7 = vadd.f32 %v365_v63, %v364_v54  ;;  %v374_v8 = vrot.slane %v373_v1, 2  ;;  %1002 = vmatprep.subr.bf16.mxu1 %v1270_v0  ;;  %v663_v52 = vshrl.u32 %v662_v51, 7  ;;  %v378_v54 = vld [vmem:[%s1567_s6] sm:$0x7]  ;;  %s1272_s6 = smov [#allocation13]  }
  0xb5   :  { %v593_v10 = vunpack.c.l.b16 %v572_v2  ;;  %v599_v11 = vsel %vm422_vm3, %v592_v3, %v598_v4  ;;  %v359_v12 = vadd.f32 %v358_v6, %v357_v62  ;;  %v573_v15 = vpack.c.bf16 %v350_v5, %v350_v5  ;;  %v1070_v63 = vld [vmem:[#allocation11 + $0x30] sm:$0xff]   ;;  %s894_s28 = sshll.u32 %s1272_s6, 4  ;;  %s895_s28 = int_to_ptr.vmem [resolvable:$true] %s894_s28 }
  0xb6   :  { %v367_v13 = vrot.slane %v366_v7, 1  ;;  %v375_v14 = vadd.f32 %v374_v8, %v373_v1  ;;  %v664_v53 = vsub.s32 0, %v663_v52  ;;  %v1071_v1 = vld [vmem:[#allocation11 + $0x38] sm:$0xff]   ;;  %v687_v2 = vsub.s32 1, %v663_v52  ;;  %s1204_s12 = scalar_lea.vmem %s895_s28, 128  ;;  %p1209_p7 = scmp.lt.s32.totalorder %s895_s28, %s895_s28 }
  0xb7   :  { %v600_v16 = vsel %vm424_vm4, %v593_v10, %v599_v11  ;;  %v574_v19 = vpack.c.bf16 %v359_v12, %v359_v12  ;;  %v594_v20 = vunpack.c.l.b16 %v573_v15  ;;  %1003 = vmatpush3.bf16.msra.mxu1 %v1059_v9  ;;  %p1205_p6 = scmp.ne.s32.totalorder %s895_s28, %s1204_s12  ;;  %p1210_p8 = scmp.lt.s32.totalorder %s1204_s12, %s1204_s12 }
  0xb8   :  { %v368_v17 = vadd.f32 %v367_v13, %v366_v7  ;;  %v376_v18 = vrot.slane %v375_v14, 1  ;;  %1004 = vmatprep.subr.bf16.mxu1 %v1270_v0  ;;  %v665_v55 = vrot.slane %v378_v54, %v664_v53  ;;  %v688_v3 = vrot.slane %v378_v54, %v687_v2 }
  0xb9   :  { %v595_v23 = vunpack.c.l.b16 %v574_v19  ;;  %v601_v24 = vsel %vm426_vm5, %v594_v20, %v600_v16  ;;  %p1211_p9 = por %p1210_p8, %p1209_p7 }
  0xba   :  { %v377_v21 = vadd.f32 %v376_v18, %v375_v14  ;;  %v575_v22 = vpack.c.bf16 %v368_v17, %v368_v17 }
  0xbb   :  { %v602_v27 = vsel %vm428_vm6, %v595_v23, %v601_v24  ;;  %1005 = vmatpush3.bf16.msra.mxu1 %v1060_v32  ;;  %p1212_p10 = pnand %p1211_p9, %p1205_p6 }
  0xbc   :  { %v576_v25 = vpack.c.bf16 %v377_v21, %v377_v21  ;;  %v596_v26 = vunpack.c.l.b16 %v575_v22  ;;  %1006 = vmatprep.subr.bf16.mxu1 %v1270_v0 }
  0xbe   :  { %v597_v28 = vunpack.c.l.b16 %v576_v25  ;;  %v603_v29 = vsel %vm430_vm7, %v596_v26, %v602_v27 }
  0xbf   :  { %1007 = vmatpush3.bf16.msra.mxu1 %v1061_v33 }
  0xc0   :  { %v604_v30 = vsel %vm432_vm8, %v597_v28, %v603_v29  ;;  %1008 = vmatprep.subr.bf16.mxu1 %v1270_v0 }
  0xc1   :  { %v605_v31 = vpack.c.b16 %v604_v30, %v604_v30 }
  0xc3   :  { %993 = vmatmul.mubr.msk.bf16.vlgmr.msra.gmra.mrb[4].mxu0 %vm129_vm1, %v605_v31  ;;  %1009 = vmatpush3.bf16.msra.mxu1 %v1062_v34 }
  0xc4   :  { %1032 = vmatprep.mubr.msk.bf16.mxu0 %vm1271_vm0, %v1270_v0  ;;  %1010 = vmatprep.subr.bf16.mxu1 %v1270_v0 }
  0xc5   :  { %1017 = vmatpush3.bf16.msra.mxu0 %v1064_v36 }
  0xc6   :  { %1018 = vmatprep.subr.bf16.mxu0 %v1270_v0 }
  0xc7   :  { %1011 = vmatpush3.bf16.msra.mxu1 %v1063_v35 }
  0xc9   :  { %1019 = vmatpush3.bf16.msra.mxu0 %v1065_v37 }
  0xca   :  { %1020 = vmatprep.subr.bf16.mxu0 %v1270_v0 }
  0xcd   :  { %1021 = vmatpush3.bf16.msra.mxu0 %v1066_v38 }
  0xce   :  { %1022 = vmatprep.subr.bf16.mxu0 %v1270_v0 }
  0xd1   :  { %1023 = vmatpush3.bf16.msra.mxu0 %v1067_v39 }
  0xd2   :  { %1024 = vmatprep.subr.bf16.mxu0 %v1270_v0 }
  0xd5   :  { %1025 = vmatpush3.bf16.msra.mxu0 %v1068_v40 }
  0xd6   :  { %1026 = vmatprep.subr.bf16.mxu0 %v1270_v0 }
  0xd9   :  { %1027 = vmatpush3.bf16.msra.mxu0 %v1069_v41 }
  0xda   :  { %1028 = vmatprep.subr.bf16.mxu0 %v1270_v0 }
  0xdd   :  { %1029 = vmatpush3.bf16.msra.mxu0 %v1070_v63 }
  0xde   :  { %1030 = vmatprep.subr.bf16.mxu0 %v1270_v0 }
  0xe1   :  { %1031 = vmatpush3.bf16.msra.mxu0 %v1071_v1 }
 0x164   :  { %v484_v42 = vpop.f32.mrb[0].mxu0 }
 0x165   :  { %v978_v43 = vpop.f32.mrb[1].mxu0 }
 0x166   :  { %v487_v44 = vpop.f32.mrb[2].mxu0 }
 0x167   :  { %v979_v45 = vpop.f32.mrb[3].mxu0 }
 0x17d   :  { %v563_v46 = vpop.f32.mrb[0].mxu1 }
 0x17e   :  { %v564_v47 = vadd.f32 %v563_v46, %v484_v42  ;;  %v986_v48 = vpop.f32.mrb[1].mxu1 }
 0x17f   :  { %v566_v49 = vpop.f32.mrb[2].mxu1 }
 0x180   :  { %v987_v50 = vpop.f32.mrb[3].mxu1 }
 0x196   :  { %v655_v56 = vpop.f32.mrb[4].mxu0 }
 0x197   :  { %v661_v57 = vadd.f32 %v655_v56, %v564_v47  ;;  %v994_v58 = vpop.f32.mrb[5].mxu0 }
 0x198   :  { %v658_v59 = vpop.f32.mrb[6].mxu0 }
 0x199   :  { %v666_v60 = vadd.f32 %v665_v55, %v661_v57  ;;  %v995_v61 = vpop.f32.mrb[7].mxu0 }
 0x19b   :  { %v668_v62 = vpack.c.bf16 %v666_v60, %v666_v60  ;;  %667 = vst [vmem:[#allocation13] sm:$0xff] %v666_v60 }
 0x19d   :  { %1013 = vmatmul.mubr.bf16.vlgmr.msra.gmra.mrb[4].mxu1 %v668_v62 }
 0x270   :  { %v771_v4 = vpop.f32.mrb[4].mxu1 }
 0x271   :  { %v772_v5 = vadd.f32 %v771_v4, %v688_v3  ;;  %v1014_v6 = vpop.f32.mrb[5].mxu1 }
 0x272   :  { %v774_v7 = vpop.f32.mrb[6].mxu1 }
 0x273   :  { %v777_v8 = vmax.f32 %v772_v5, 0.0  ;;  %v1015_v9 = vpop.f32.mrb[7].mxu1 }
 0x275   :  { %v778_v10 = vpack.c.bf16 %v777_v8, %v777_v8 }
 0x277   :  { %1033 = vmatmul.mubr.bf16.vlgmr.msra.gmra.mrb[8].mxu0 %v778_v10 }
 0x278   :  { %1215 = shalt.err (!%p1212_p10)
}
 0x279   :  { %s1216_s19 = scalar_lea.hbm %s1568_s7, 128 }
 0x27a   :  { %p1217_p11 = scmp.ne.s32.totalorder %s1568_s7, %s1216_s19  ;;  %p1220_p12 = scmp.lt.u32.totalorder %s1216_s19, %s1568_s7 }
 0x27c   :  { %p1222_p13 = pnand %p1220_p12, %p1217_p11 }
 0x27e   :  { %1225 = shalt.err (!%p1222_p13)
}
 0x27f   :  { %897 = dma.vmem_to_hbm [thread:$0]  %s895_s28, 128, %s1568_s7, [#allocation4]   ;;  %v797_v0 = vsub.s32 2, %v663_v52 }
 0x280   :  { %s1273_s24 = smov [#allocation14]  }
 0x281   :  { %v798_v11 = vrot.slane %v378_v54, %v797_v0  ;;  %s904_s25 = sshll.u32 %s1273_s24, 4  ;;  %s905_s25 = int_to_ptr.vmem [resolvable:$true] %s904_s25 }
 0x282   :  { %s1226_s2 = scalar_lea.vmem %s905_s25, 128  ;;  %p1231_p1 = scmp.lt.s32.totalorder %s905_s25, %s905_s25 }
 0x283   :  { %p1227_p0 = scmp.ne.s32.totalorder %s905_s25, %s1226_s2  ;;  %p1232_p2 = scmp.lt.s32.totalorder %s1226_s2, %s1226_s2 }
 0x285   :  { %p1233_p3 = por %p1232_p2, %p1231_p1 }
 0x287   :  { %p1234_p4 = pnand %p1233_p3, %p1227_p0 }
 0x34a   :  { %v881_v12 = vpop.f32.mrb[8].mxu0 }
 0x34b   :  { %v882_v13 = vadd.f32 %v881_v12, %v798_v11  ;;  %v1034_v14 = vpop.f32.mrb[9].mxu0 }
 0x34c   :  { %v884_v15 = vpop.f32.mrb[10].mxu0 }
 0x34d   :  { %887 = vst [vmem:[#allocation14] sm:$0xff] %v882_v13  ;;  %v1035_v16 = vpop.f32.mrb[11].mxu0 }
 0x34e   :  { %1237 = shalt.err (!%p1234_p4)
}
 0x34f   :  { %s1238_s18 = scalar_lea.hbm %s1569_s8, 128 }
 0x350   :  { %p1239_p5 = scmp.ne.s32.totalorder %s1569_s8, %s1238_s18  ;;  %p1242_p6 = scmp.lt.u32.totalorder %s1238_s18, %s1569_s8 }
 0x352   :  { %p1244_p7 = pnand %p1242_p6, %p1239_p5 }
 0x354   :  { %1247 = shalt.err (!%p1244_p7)
}
 0x355   :  { %907 = dma.vmem_to_hbm [thread:$0]  %s905_s25, 128, %s1569_s8, [#allocation15]  }
 0x356   :  { %1256 = dma.done.wait [#allocation4], 128  }
 0x357   :  { %1257 = vsyncadd [#allocation4], 4294967168 }
 0x358   :  { %1258 = dma.done.wait [#allocation15], 128  }
 0x359   :  { %1259 = vsyncadd [#allocation15], 4294967168 }
 0x35a   :  { %914 = vsyncpa [#allocation3], 1 }
 0x35b   :  { %915 = vsyncpa [#allocation6], 1 }
 0x35c   :  { %916 = vsyncpa [#allocation9], 1 }
 0x35d   :  { %917 = vsyncpa [#allocation12], 1 }
 0x35e   :  { %918 = vsyncpa [#allocation4], 1 }
 0x35f   :  { %919 = vsyncpa [#allocation15], 1 }

</bundles_post_ra>
